<compile_context>
chip_gen: v6e
topology: v6e:2x2x1
jax: 0.10.0
libtpu: 0.0.40
codegen_flags: <defaults>
</compile_context>

<pallas_src>
import jax
import jax.numpy as jnp
import numpy as np
from jax import lax
from jax.experimental import pallas as pl
from jax.experimental.pallas import tpu as pltpu


# ----------------------------- Pallas kernel ------------------------------- #
def _ds_conv_kernel(x_ref, w_ref, b_ref, o_ref):
    """3x3 / stride-2 conv on a block of Nb images, as four dense GEMMs.

    x_ref: (Nb, OH+1, OW+1, 4*Cin)  2x2 space-to-depth of the zero-padded input
    w_ref: (4, 4*Cin, Cout)         dense weight slab per (dr, dc) shift
    b_ref: (1, Cout)                bias row
    o_ref: (Nb*OH*OW, Cout)         output pixels x channels (natural GEMM layout)
    """
    nb, ohp1, owp1, k4 = x_ref.shape
    oh, ow = ohp1 - 1, owp1 - 1
    m = nb * oh * ow

    def shifted_gemm(dr, dc):
        # Static slice of the resident block along non-lane axes; collapsing
        # (Nb, OH, OW) into the M dim keeps the lane (contraction) dim intact.
        lhs = x_ref[:, dr:dr + oh, dc:dc + ow, :].reshape(m, k4)
        return jnp.dot(lhs, w_ref[2 * dr + dc],
                       preferred_element_type=jnp.float32)

    acc = (shifted_gemm(0, 0) + shifted_gemm(0, 1)
           + shifted_gemm(1, 0) + shifted_gemm(1, 1))
    o_ref[...] = (acc + b_ref[...]).astype(o_ref.dtype)


# ------------------------------ Helpers ------------------------------------ #
def _round_up(x, m):
    return (x + m - 1) // m * m


def _padded_block_bytes(shape, itemsize=4):
    """VMEM bytes of one buffer of a block, with (8, 128) tile padding."""
    shape = tuple(shape)
    *lead, sub, lane = shape
    lead_elems = 1
    for d in lead:
        lead_elems *= d
    return lead_elems * _round_up(sub, 8) * _round_up(lane, 128) * itemsize


def _pick_batch_block(n, rows_per_image):
    """Images per grid step: fill the MXU M dim (>= 128 pixel rows) while
    keeping as many grid steps as possible for pipelining / megacore."""
    target = max(1, -(-128 // rows_per_image))      # smallest Nb with M >= 128
    nb = 1
    for d in range(1, n + 1):                       # largest divisor of n <= target
        if n % d == 0 and d <= target:
            nb = d
    return nb


# ------------------------------ Wrapper ------------------------------------ #
@jax.jit
def downsample(x, weight, bias):
    """nn.Conv2d(ch, ch, kernel_size=3, stride=2, padding=1)(x) in Pallas.

    x:      (N, C, H, W)  float32 NCHW      weight: (C, C, 3, 3) float32 OIHW
    bias:   (C,)          float32           returns (N, C, OH, OW) float32 NCHW
    """
    N, Cin, H, W = x.shape
    Cout = weight.shape[0]
    OH = (H - 1) // 2 + 1
    OW = (W - 1) // 2 + 1
    OHp1, OWp1 = OH + 1, OW + 1
    K4 = 4 * Cin                 # channels after 2x2 space-to-depth
    KEFF = 4 * K4                # contraction width summed over the 4 shifts

    # --- activation: zero-pad + 2x2 space-to-depth (one fused XLA copy) ----- #
    pad_b = 2 * OHp1 - (H + 1)
    pad_r = 2 * OWp1 - (W + 1)
    xp = jnp.pad(x, ((0, 0), (0, 0), (1, pad_b), (1, pad_r)))        # NCHW pad
    s2d = xp.reshape(N, Cin, OHp1, 2, OWp1, 2)
    s2d = jnp.transpose(s2d, (0, 2, 4, 3, 5, 1))                     # (n,a,b,pr,pc,ci)
    s2d = s2d.reshape(N, OHp1, OWp1, K4)                             # k = pr*2C + pc*C + ci

    # --- weights: (4, 4*Cin, Cout), one dense slab per (dr, dc); no zero band  #
    wp = jnp.pad(weight, ((0, 0), (0, 0), (0, 1), (0, 1)))           # (Cout,Cin,4,4)
    w6 = wp.reshape(Cout, Cin, 2, 2, 2, 2)                           # (co,ci,dr,pr,dc,pc)
    w4 = jnp.transpose(w6, (2, 4, 3, 5, 1, 0)).reshape(4, K4, Cout)  # [2dr+dc, pr*2C+pc*C+ci, co]

    brow = bias.reshape(1, Cout)

    # --- tiling: Nb images per grid step so the GEMM M dim is >= 128 -------- #
    Nb = _pick_batch_block(N, OH * OW)
    grid = (N // Nb,)
    M_blk = Nb * OH * OW

    x_blk = (Nb, OHp1, OWp1, K4)
    w_blk = (4, K4, Cout)
    b_blk = (1, Cout)
    o_blk = (M_blk, Cout)

    # VMEM budget from actual block sizes (auto-pipeline double-buffers each
    # operand), with headroom, capped under v7x's 64 MiB (review #4).
    vmem_needed = 2 * sum(_padded_block_bytes(s) for s in (x_blk, w_blk, b_blk, o_blk))
    vmem_limit = int(min(64 * 1024 * 1024, max(16 * 1024 * 1024, 4 * vmem_needed)))

    flops = 2 * N * OH * OW * KEFF * Cout            # true MXU work (no zero band)
    bytes_accessed = 4 * (s2d.size + w4.size + brow.size + N * OH * OW * Cout)

    out_flat = pl.pallas_call(
        _ds_conv_kernel,
        out_shape=jax.ShapeDtypeStruct((N * OH * OW, Cout), x.dtype),
        grid_spec=pltpu.PrefetchScalarGridSpec(
            num_scalar_prefetch=0,
            grid=grid,
            in_specs=[
                pl.BlockSpec(x_blk, lambda n: (n, 0, 0, 0)),   # per-step image block
                pl.BlockSpec(w_blk, lambda n: (0, 0, 0)),      # resident dense weights
                pl.BlockSpec(b_blk, lambda n: (0, 0)),         # resident bias row
            ],
            out_specs=pl.BlockSpec(o_blk, lambda n: (n, 0)),
        ),
        compiler_params=pltpu.CompilerParams(
            dimension_semantics=("parallel",),       # independent image blocks
            vmem_limit_bytes=vmem_limit,
        ),
        cost_estimate=pl.CostEstimate(
            flops=flops, transcendentals=0, bytes_accessed=bytes_accessed),
    )(s2d, w4, brow)

    out = out_flat.reshape(N, OH, OW, Cout)                          # NHWC
    return jnp.transpose(out, (0, 3, 1, 2))                          # NCHW interface


# ------------------------------ Reference ----------------------------------- #
def downsample_ref(x, weight, bias):
    y = lax.conv_general_dilated(
        x, weight,
        window_strides=(2, 2),
        padding=((1, 1), (1, 1)),
        dimension_numbers=("NCHW", "OIHW", "NCHW"),
    )
    return y + bias[None, :, None, None]


# -------------------------------- Main -------------------------------------- #
if __name__ == "__main__":
    N, CH, H, W = 2, 4, 16, 16

    key = jax.random.PRNGKey(0)
    kx, kw, kb = jax.random.split(key, 3)

    x = jax.random.normal(kx, (N, CH, H, W), dtype=jnp.float32)
    fan_in = CH * 3 * 3
    bound = 1.0 / np.sqrt(fan_in)
    weight = jax.random.uniform(kw, (CH, CH, 3, 3), dtype=jnp.float32,
                                minval=-bound, maxval=bound)
    bias = jax.random.uniform(kb, (CH,), dtype=jnp.float32,
                              minval=-bound, maxval=bound)

    out = jax.block_until_ready(downsample(x, weight, bias))
    ref = jax.block_until_ready(downsample_ref(x, weight, bias))

    assert out.shape == (N, CH, H // 2, W // 2), out.shape
    np.testing.assert_allclose(np.asarray(out), np.asarray(ref),
                               rtol=1e-4, atol=1e-4)

    print("KERNEL_OK")
</pallas_src>

<mosaic_0001>
module attributes {stable_mosaic.version = 11 : i64} {
  func.func @_ds_conv_kernel(%arg0: i32, %arg1: memref<2x9x9x16xf32, #tpu.memory_space<vmem>>, %arg2: memref<4x16x4xf32, #tpu.memory_space<vmem>>, %arg3: memref<1x4xf32, #tpu.memory_space<vmem>>, %arg4: memref<128x4xf32, #tpu.memory_space<vmem>>) attributes {dimension_semantics = [#tpu.dimension_semantics<parallel>], iteration_bounds = array<i64: 1>, scalar_prefetch = 0 : i64, scratch_operands = 0 : i64, tpu.core_type = #tpu.core_type<tc>, window_params = [{transform_indices = @transform_0, window_bounds = array<i64: 2, 9, 9, 16>}, {pipeline_mode = #tpu.pipeline_mode<synchronous>, transform_indices = @transform_1, window_bounds = array<i64: 4, 16, 4>}, {pipeline_mode = #tpu.pipeline_mode<synchronous>, transform_indices = @transform_2, window_bounds = array<i64: 1, 4>}, {transform_indices = @transform_3, window_bounds = array<i64: 128, 4>}]} {
    %c0 = arith.constant 0 : index
    %c0_0 = arith.constant 0 : index
    %c0_1 = arith.constant 0 : index
    %c0_2 = arith.constant 0 : index
    %0 = vector.load %arg1[%c0, %c0_0, %c0_1, %c0_2] : memref<2x9x9x16xf32, #tpu.memory_space<vmem>>, vector<2x8x8x16xf32>
    %1 = vector.shape_cast %0 : vector<2x8x8x16xf32> to vector<128x16xf32>
    %c0_3 = arith.constant 0 : index
    %c0_4 = arith.constant 0 : index
    %c0_5 = arith.constant 0 : index
    %2 = vector.load %arg2[%c0_3, %c0_4, %c0_5] : memref<4x16x4xf32, #tpu.memory_space<vmem>>, vector<1x16x4xf32>
    %3 = vector.shape_cast %2 : vector<1x16x4xf32> to vector<16x4xf32>
    %cst = arith.constant dense<0.000000e+00> : vector<128x4xf32>
    %4 = tpu.matmul %1, %3, %cst {dimension_numbers = #tpu.dot_dimension_numbers<[1], [0], [0], [1], [0, 0, 1, 1], [], []>} : vector<128x16xf32>, vector<16x4xf32>, vector<128x4xf32> -> vector<128x4xf32>
    %c0_6 = arith.constant 0 : index
    %c0_7 = arith.constant 0 : index
    %c1 = arith.constant 1 : index
    %c0_8 = arith.constant 0 : index
    %5 = vector.load %arg1[%c0_6, %c0_7, %c1, %c0_8] : memref<2x9x9x16xf32, #tpu.memory_space<vmem>>, vector<2x8x8x16xf32>
    %6 = vector.shape_cast %5 : vector<2x8x8x16xf32> to vector<128x16xf32>
    %c1_9 = arith.constant 1 : index
    %c0_10 = arith.constant 0 : index
    %c0_11 = arith.constant 0 : index
    %7 = vector.load %arg2[%c1_9, %c0_10, %c0_11] : memref<4x16x4xf32, #tpu.memory_space<vmem>>, vector<1x16x4xf32>
    %8 = vector.shape_cast %7 : vector<1x16x4xf32> to vector<16x4xf32>
    %cst_12 = arith.constant dense<0.000000e+00> : vector<128x4xf32>
    %9 = tpu.matmul %6, %8, %cst_12 {dimension_numbers = #tpu.dot_dimension_numbers<[1], [0], [0], [1], [0, 0, 1, 1], [], []>} : vector<128x16xf32>, vector<16x4xf32>, vector<128x4xf32> -> vector<128x4xf32>
    %10 = arith.addf %4, %9 : vector<128x4xf32>
    %c0_13 = arith.constant 0 : index
    %c1_14 = arith.constant 1 : index
    %c0_15 = arith.constant 0 : index
    %c0_16 = arith.constant 0 : index
    %11 = vector.load %arg1[%c0_13, %c1_14, %c0_15, %c0_16] : memref<2x9x9x16xf32, #tpu.memory_space<vmem>>, vector<2x8x8x16xf32>
    %12 = vector.shape_cast %11 : vector<2x8x8x16xf32> to vector<128x16xf32>
    %c2 = arith.constant 2 : index
    %c0_17 = arith.constant 0 : index
    %c0_18 = arith.constant 0 : index
    %13 = vector.load %arg2[%c2, %c0_17, %c0_18] : memref<4x16x4xf32, #tpu.memory_space<vmem>>, vector<1x16x4xf32>
    %14 = vector.shape_cast %13 : vector<1x16x4xf32> to vector<16x4xf32>
    %cst_19 = arith.constant dense<0.000000e+00> : vector<128x4xf32>
    %15 = tpu.matmul %12, %14, %cst_19 {dimension_numbers = #tpu.dot_dimension_numbers<[1], [0], [0], [1], [0, 0, 1, 1], [], []>} : vector<128x16xf32>, vector<16x4xf32>, vector<128x4xf32> -> vector<128x4xf32>
    %16 = arith.addf %10, %15 : vector<128x4xf32>
    %c0_20 = arith.constant 0 : index
    %c1_21 = arith.constant 1 : index
    %c1_22 = arith.constant 1 : index
    %c0_23 = arith.constant 0 : index
    %17 = vector.load %arg1[%c0_20, %c1_21, %c1_22, %c0_23] : memref<2x9x9x16xf32, #tpu.memory_space<vmem>>, vector<2x8x8x16xf32>
    %18 = vector.shape_cast %17 : vector<2x8x8x16xf32> to vector<128x16xf32>
    %c3 = arith.constant 3 : index
    %c0_24 = arith.constant 0 : index
    %c0_25 = arith.constant 0 : index
    %19 = vector.load %arg2[%c3, %c0_24, %c0_25] : memref<4x16x4xf32, #tpu.memory_space<vmem>>, vector<1x16x4xf32>
    %20 = vector.shape_cast %19 : vector<1x16x4xf32> to vector<16x4xf32>
    %cst_26 = arith.constant dense<0.000000e+00> : vector<128x4xf32>
    %21 = tpu.matmul %18, %20, %cst_26 {dimension_numbers = #tpu.dot_dimension_numbers<[1], [0], [0], [1], [0, 0, 1, 1], [], []>} : vector<128x16xf32>, vector<16x4xf32>, vector<128x4xf32> -> vector<128x4xf32>
    %22 = arith.addf %16, %21 : vector<128x4xf32>
    %c0_27 = arith.constant 0 : index
    %c0_28 = arith.constant 0 : index
    %23 = vector.load %arg3[%c0_27, %c0_28] : memref<1x4xf32, #tpu.memory_space<vmem>>, vector<1x4xf32>
    %24 = vector.broadcast %23 : vector<1x4xf32> to vector<128x4xf32>
    %25 = arith.addf %22, %24 : vector<128x4xf32>
    %c0_29 = arith.constant 0 : index
    %c0_30 = arith.constant 0 : index
    %26 = vector.load %arg4[%c0_29, %c0_30] : memref<128x4xf32, #tpu.memory_space<vmem>>, vector<128x4xf32>
    tpu.vector_store %arg4[%c0_29, %c0_30], %25 {strides = array<i32>} : memref<128x4xf32, #tpu.memory_space<vmem>>, vector<128x4xf32>,
    return
  }
  func.func @transform_0(%arg0: i32) -> (i32, i32, i32, i32) {
    %c0_i32 = arith.constant 0 : i32
    %c0_i32_0 = arith.constant 0 : i32
    %c0_i32_1 = arith.constant 0 : i32
    %c0_i32_2 = arith.constant 0 : i32
    return %arg0, %c0_i32, %c0_i32_0, %c0_i32_1 : i32, i32, i32, i32
  }
  func.func @transform_1(%arg0: i32) -> (i32, i32, i32) {
    %c0_i32 = arith.constant 0 : i32
    %c0_i32_0 = arith.constant 0 : i32
    %c0_i32_1 = arith.constant 0 : i32
    %c0_i32_2 = arith.constant 0 : i32
    return %c0_i32, %c0_i32_0, %c0_i32_1 : i32, i32, i32
  }
  func.func @transform_2(%arg0: i32) -> (i32, i32) {
    %c0_i32 = arith.constant 0 : i32
    %c0_i32_0 = arith.constant 0 : i32
    %c0_i32_1 = arith.constant 0 : i32
    return %c0_i32, %c0_i32_0 : i32, i32
  }
  func.func @transform_3(%arg0: i32) -> (i32, i32) {
    %c0_i32 = arith.constant 0 : i32
    %c0_i32_0 = arith.constant 0 : i32
    return %arg0, %c0_i32 : i32, i32
  }
}

</mosaic_0001>

<bundles_post_ra>
// kernel: downsample.1
= control target key start
LH: loop header
LB: loop body
LE: loop exit
PB: predicated region body
PF: predicated region fallthrough
CT: control target
= control target key end

     0   :  { %vm51_vm0 = vcmask 130048   ;;  %vm918_vm1 = vcmask 31744   ;;  %s1607_s1 = inlined_call_operand.vmem [shape: f32[4,16,4], index: 1, kind: input, shape index: {}]   ;;  %s1608_s0 = inlined_call_operand.vmem [shape: f32[2,9,9,16], index: 0, kind: input, shape index: {}]   ;;  %s1609_s2 = inlined_call_operand.vmem [shape: f32[1,4], index: 2, kind: input, shape index: {}]   ;;  %s1610_s3 = inlined_call_operand.vmem [shape: f32[128,4], index: 3, kind: output, shape index: {}]  }
   0x1   :  { %v940_v0 = vld [vmem:[%s1607_s1 + $0x18] sm:$0xff]  ;;  %v31_v1 = vld [vmem:[%s1607_s1 + $0x8] sm:$0xff]  ;;  %v939_v2 = vld [vmem:[%s1607_s1 + $0x10] sm:$0xff] }
   0x2   :  { %1114 = vmatprep.subr.mxu0 %v940_v0  ;;  %1142 = vmatprep.subr.mxu1 %v31_v1  ;;  %v30_v3 = vld [vmem:[%s1607_s1] sm:$0xff]  ;;  %v1267_v6 = vld [vmem:[%s1608_s0 + $0x11] sm:$0xff]  ;;  %v990_v8 = vld [vmem:[%s1607_s1 + $0x28] sm:$0xff] }
   0x3   :  { %v32_v4 = vld [vmem:[%s1608_s0 + $0x1] sm:$0xff]  ;;  %1115 = vmatpush3.msra.mxu0 %v940_v0  ;;  %1143 = vmatpush3.msra.mxu1 %v31_v1  ;;  %v1272_v7 = vld [vmem:[%s1608_s0 + $0x10] sm:$0xff]  ;;  %v1024_v9 = vld [vmem:[%s1607_s1 + $0x38] sm:$0xff] }
   0x4   :  { %v14_v5 = vld [vmem:[%s1608_s0] sm:$0xff]  ;;  %1116 = vmatprep.subr.mxu0 %v939_v2  ;;  %1144 = vmatprep.subr.mxu1 %v30_v3  ;;  %v1299_v12 = vld [vmem:[%s1608_s0 + $0x31] sm:$0xff] }
   0x5   :  { %1117 = vmatpush3.msra.mxu0 %v939_v2  ;;  %1118 = vmatprep.mubr.msk.f32.mxu0 %vm51_vm0, %v32_v4  ;;  %v1285_v10 = vld [vmem:[%s1608_s0 + $0x21] sm:$0xff]  ;;  %v1304_v13 = vld [vmem:[%s1608_s0 + $0x30] sm:$0xff] }
   0x6   :  { %1145 = vmatpush3.msra.mxu1 %v30_v3  ;;  %1146 = vmatprep.mubr.msk.f32.mxu1 %vm51_vm0, %v14_v5  ;;  %v1294_v11 = vld [vmem:[%s1608_s0 + $0x20] sm:$0xff]  ;;  %v1023_v17 = vld [vmem:[%s1607_s1 + $0x30] sm:$0xff] }
   0x7   :  { %1119 = vmatmul.mubr.msk.f32.vlgmr.msra.gmra.mxu0 %vm51_vm0, %v1267_v6  ;;  %1147 = vmatmul.mubr.msk.f32.vlgmr.msra.gmra.mxu1 %vm51_vm0, %v1272_v7  ;;  %v1311_v14 = vld [vmem:[%s1608_s0 + $0x41] sm:$0xff]  ;;  %v37_v18 = vld [vmem:[%s1608_s0 + $0x51] sm:$0xff] }
   0x8   :  { %1170 = vmatprep.subr.mxu0 %v990_v8  ;;  %1198 = vmatprep.subr.mxu1 %v1024_v9  ;;  %v1316_v15 = vld [vmem:[%s1608_s0 + $0x40] sm:$0xff]  ;;  %v19_v19 = vld [vmem:[%s1608_s0 + $0x50] sm:$0xff] }
   0x9   :  { %1171 = vmatpush3.msra.mxu0 %v990_v8  ;;  %1121 = vmatprep.mubr.msk.f32.mxu0 %vm51_vm0, %v1285_v10  ;;  %v989_v16 = vld [vmem:[%s1607_s1 + $0x20] sm:$0xff]  ;;  %v39_v22 = vld [vmem:[%s1608_s0 + $0x71] sm:$0xff] }
   0xa   :  { %1149 = vmatprep.mubr.msk.f32.mxu1 %vm51_vm0, %v1294_v11  ;;  %1199 = vmatpush3.msra.mxu1 %v1024_v9  ;;  %v38_v20 = vld [vmem:[%s1608_s0 + $0x61] sm:$0xff]  ;;  %v21_v23 = vld [vmem:[%s1608_s0 + $0x70] sm:$0xff] }
   0xb   :  { %1122 = vmatmul.mubr.msk.f32.gmra.mxu0 %vm51_vm0, %v1299_v12  ;;  %1150 = vmatmul.mubr.msk.f32.gmra.mxu1 %vm51_vm0, %v1304_v13  ;;  %v20_v21 = vld [vmem:[%s1608_s0 + $0x60] sm:$0xff]  ;;  %v40_v24 = vld [vmem:[%s1608_s0 + $0x91] sm:$0xff] }
   0xc   :  { %1124 = vmatprep.mubr.msk.f32.mxu0 %vm51_vm0, %v1311_v14  ;;  %1152 = vmatprep.mubr.msk.f32.mxu1 %vm51_vm0, %v1316_v15  ;;  %v22_v25 = vld [vmem:[%s1608_s0 + $0x90] sm:$0xff]  ;;  %v41_v26 = vld [vmem:[%s1608_s0 + $0xa1] sm:$0xff] }
   0xd   :  { %1172 = vmatprep.subr.mxu0 %v989_v16  ;;  %1200 = vmatprep.subr.mxu1 %v1023_v17  ;;  %v23_v27 = vld [vmem:[%s1608_s0 + $0xa0] sm:$0xff]  ;;  %v42_v28 = vld [vmem:[%s1608_s0 + $0xb1] sm:$0xff] }
   0xe   :  { %1173 = vmatpush3.msra.mxu0 %v989_v16  ;;  %1201 = vmatpush3.msra.mxu1 %v1023_v17  ;;  %v24_v29 = vld [vmem:[%s1608_s0 + $0xb0] sm:$0xff]  ;;  %v43_v30 = vld [vmem:[%s1608_s0 + $0xc1] sm:$0xff]  ;;  %v1509_v17 = vld [vmem:[%s1609_s2] ss:$0 sm:$0xff] }
   0xf   :  { %1125 = vmatmul.mubr.msk.f32.gmra.mxu0 %vm51_vm0, %v37_v18  ;;  %1153 = vmatmul.mubr.msk.f32.gmra.mxu1 %vm51_vm0, %v19_v19  ;;  %v25_v31 = vld [vmem:[%s1608_s0 + $0xc0] sm:$0xff]  ;;  %v44_v32 = vld [vmem:[%s1608_s0 + $0xd1] sm:$0xff] }
  0x10   :  { %1127 = vmatprep.mubr.msk.f32.mxu0 %vm51_vm0, %v38_v20  ;;  %1155 = vmatprep.mubr.msk.f32.mxu1 %vm51_vm0, %v20_v21  ;;  %v26_v33 = vld [vmem:[%s1608_s0 + $0xd0] sm:$0xff]  ;;  %v45_v34 = vld [vmem:[%s1608_s0 + $0xe1] sm:$0xff] }
  0x11   :  { %v27_v35 = vld [vmem:[%s1608_s0 + $0xe0] sm:$0xff]  ;;  %v46_v36 = vld [vmem:[%s1608_s0 + $0xf1] sm:$0xff] }
  0x12   :  { %v28_v37 = vld [vmem:[%s1608_s0 + $0xf0] sm:$0xff]  ;;  %v47_v38 = vld [vmem:[%s1608_s0 + $0x101] sm:$0xff] }
  0x13   :  { %1128 = vmatmul.mubr.msk.f32.gmra.mxu0 %vm51_vm0, %v39_v22  ;;  %1156 = vmatmul.mubr.msk.f32.gmra.mxu1 %vm51_vm0, %v21_v23  ;;  %v29_v39 = vld [vmem:[%s1608_s0 + $0x100] sm:$0xff]  ;;  %v988_v42 = vld [vmem:[%s1608_s0 + $0x110] sm:$0xff] }
  0x14   :  { %1130 = vmatprep.mubr.msk.f32.mxu0 %vm51_vm0, %v40_v24  ;;  %1158 = vmatprep.mubr.msk.f32.mxu1 %vm51_vm0, %v22_v25  ;;  %v980_v40 = vld [vmem:[%s1608_s0 + $0x80] sm:$0xff]  ;;  %v1022_v43 = vld [vmem:[%s1608_s0 + $0x111] sm:$0xff] }
  0x15   :  { %v1014_v41 = vld [vmem:[%s1608_s0 + $0x81] sm:$0xff] }
  0x17   :  { %1131 = vmatmul.mubr.msk.f32.gmra.mxu0 %vm51_vm0, %v41_v26  ;;  %1159 = vmatmul.mubr.msk.f32.gmra.mxu1 %vm51_vm0, %v23_v27 }
  0x18   :  { %1133 = vmatprep.mubr.msk.f32.mxu0 %vm51_vm0, %v42_v28  ;;  %1161 = vmatprep.mubr.msk.f32.mxu1 %vm51_vm0, %v24_v29 }
  0x1b   :  { %1134 = vmatmul.mubr.msk.f32.gmra.mxu0 %vm51_vm0, %v43_v30  ;;  %1162 = vmatmul.mubr.msk.f32.gmra.mxu1 %vm51_vm0, %v25_v31 }
  0x1c   :  { %1136 = vmatprep.mubr.msk.f32.mxu0 %vm51_vm0, %v44_v32  ;;  %1164 = vmatprep.mubr.msk.f32.mxu1 %vm51_vm0, %v26_v33 }
  0x1f   :  { %1137 = vmatmul.mubr.msk.f32.gmra.mxu0 %vm51_vm0, %v45_v34  ;;  %1165 = vmatmul.mubr.msk.f32.gmra.mxu1 %vm51_vm0, %v27_v35 }
  0x20   :  { %1139 = vmatprep.mubr.msk.f32.mxu0 %vm51_vm0, %v46_v36  ;;  %1167 = vmatprep.mubr.msk.f32.mxu1 %vm51_vm0, %v28_v37 }
  0x23   :  { %1140 = vmatmul.mubr.msk.f32.gmra.mxu0 %vm51_vm0, %v47_v38  ;;  %1168 = vmatmul.mubr.msk.f32.gmra.mxu1 %vm51_vm0, %v29_v39 }
  0x24   :  { %1174 = vmatprep.mubr.msk.f32.mxu0 %vm51_vm0, %v1272_v7  ;;  %1202 = vmatprep.mubr.msk.f32.mxu1 %vm51_vm0, %v1267_v6 }
  0x27   :  { %1175 = vmatmul.mubr.msk.f32.vlgmr.msra.gmra.mxu0 %vm51_vm0, %v1294_v11  ;;  %1203 = vmatmul.mubr.msk.f32.vlgmr.msra.gmra.mxu1 %vm51_vm0, %v1285_v10 }
  0x28   :  { %1177 = vmatprep.mubr.msk.f32.mxu0 %vm51_vm0, %v1304_v13  ;;  %1205 = vmatprep.mubr.msk.f32.mxu1 %vm51_vm0, %v1299_v12 }
  0x2b   :  { %1178 = vmatmul.mubr.msk.f32.gmra.mxu0 %vm51_vm0, %v1316_v15  ;;  %1206 = vmatmul.mubr.msk.f32.gmra.mxu1 %vm51_vm0, %v1311_v14 }
  0x2c   :  { %1180 = vmatprep.mubr.msk.f32.mxu0 %vm51_vm0, %v19_v19  ;;  %1208 = vmatprep.mubr.msk.f32.mxu1 %vm51_vm0, %v37_v18 }
  0x2f   :  { %1181 = vmatmul.mubr.msk.f32.gmra.mxu0 %vm51_vm0, %v20_v21  ;;  %1209 = vmatmul.mubr.msk.f32.gmra.mxu1 %vm51_vm0, %v38_v20 }
  0x30   :  { %1183 = vmatprep.mubr.msk.f32.mxu0 %vm51_vm0, %v21_v23  ;;  %1211 = vmatprep.mubr.msk.f32.mxu1 %vm51_vm0, %v39_v22 }
  0x33   :  { %1184 = vmatmul.mubr.msk.f32.gmra.mxu0 %vm51_vm0, %v980_v40  ;;  %1212 = vmatmul.mubr.msk.f32.gmra.mxu1 %vm51_vm0, %v1014_v41 }
  0x34   :  { %1186 = vmatprep.mubr.msk.f32.mxu0 %vm51_vm0, %v23_v27  ;;  %1214 = vmatprep.mubr.msk.f32.mxu1 %vm51_vm0, %v41_v26 }
  0x37   :  { %1187 = vmatmul.mubr.msk.f32.gmra.mxu0 %vm51_vm0, %v24_v29  ;;  %1215 = vmatmul.mubr.msk.f32.gmra.mxu1 %vm51_vm0, %v42_v28 }
  0x38   :  { %1189 = vmatprep.mubr.msk.f32.mxu0 %vm51_vm0, %v25_v31  ;;  %1217 = vmatprep.mubr.msk.f32.mxu1 %vm51_vm0, %v43_v30 }
  0x3b   :  { %1190 = vmatmul.mubr.msk.f32.gmra.mxu0 %vm51_vm0, %v26_v33  ;;  %1218 = vmatmul.mubr.msk.f32.gmra.mxu1 %vm51_vm0, %v44_v32 }
  0x3c   :  { %1192 = vmatprep.mubr.msk.f32.mxu0 %vm51_vm0, %v27_v35  ;;  %1220 = vmatprep.mubr.msk.f32.mxu1 %vm51_vm0, %v45_v34 }
  0x3f   :  { %1193 = vmatmul.mubr.msk.f32.gmra.mxu0 %vm51_vm0, %v28_v37  ;;  %1221 = vmatmul.mubr.msk.f32.gmra.mxu1 %vm51_vm0, %v46_v36 }
  0x40   :  { %1195 = vmatprep.mubr.msk.f32.mxu0 %vm51_vm0, %v29_v39  ;;  %1223 = vmatprep.mubr.msk.f32.mxu1 %vm51_vm0, %v47_v38 }
  0x43   :  { %1196 = vmatmul.mubr.msk.f32.gmra.mxu0 %vm51_vm0, %v988_v42  ;;  %1224 = vmatmul.mubr.msk.f32.gmra.mxu1 %vm51_vm0, %v1022_v43 }
  0xc7   :  { %v1120_v44 = vpop.f32.mrf.mxu0  ;;  %v1148_v45 = vpop.f32.mrf.mxu1 }
  0xc8   :  { %v365_v12 = vadd.f32 %v1148_v45, %v1120_v44 }
  0xc9   :  { %v166_v46 = vpop.f32.mrf.mxu0  ;;  %v359_v47 = vpop.f32.mrf.mxu1 }
  0xca   :  { %v360_v15 = vadd.f32 %v359_v47, %v166_v46 }
  0xcb   :  { %v1123_v48 = vpop.f32.mrf.mxu0  ;;  %v1151_v49 = vpop.f32.mrf.mxu1 }
  0xcc   :  { %v375_v20 = vadd.f32 %v1151_v49, %v1123_v48 }
  0xcd   :  { %v176_v50 = vpop.f32.mrf.mxu0  ;;  %v369_v51 = vpop.f32.mrf.mxu1 }
  0xce   :  { %v370_v25 = vadd.f32 %v369_v51, %v176_v50 }
  0xcf   :  { %v1126_v52 = vpop.f32.mrf.mxu0  ;;  %v1154_v53 = vpop.f32.mrf.mxu1 }
  0xd0   :  { %v385_v31 = vadd.f32 %v1154_v53, %v1126_v52 }
  0xd1   :  { %v186_v54 = vpop.f32.mrf.mxu0  ;;  %v379_v55 = vpop.f32.mrf.mxu1 }
  0xd2   :  { %v380_v37 = vadd.f32 %v379_v55, %v186_v54 }
  0xd3   :  { %v1129_v56 = vpop.f32.mrf.mxu0  ;;  %v1157_v57 = vpop.f32.mrf.mxu1 }
  0xd4   :  { %v395_v43 = vadd.f32 %v1157_v57, %v1129_v56 }
  0xd5   :  { %v196_v58 = vpop.f32.mrf.mxu0  ;;  %v389_v59 = vpop.f32.mrf.mxu1 }
  0xd6   :  { %v390_v49 = vadd.f32 %v389_v59, %v196_v58 }
  0xd7   :  { %v1474_v60 = vpop.f32.mrf.mxu0  ;;  %v1476_v61 = vpop.f32.mrf.mxu1 }
  0xd8   :  { %v405_v55 = vadd.f32 %v1476_v61, %v1474_v60 }
  0xd9   :  { %v1478_v62 = vpop.f32.mrf.mxu0  ;;  %v1480_v63 = vpop.f32.mrf.mxu1 }
  0xdb   :  { %v1482_v0 = vpop.f32.mrf.mxu0  ;;  %v1484_v1 = vpop.f32.mrf.mxu1 }
  0xdd   :  { %v1486_v2 = vpop.f32.mrf.mxu0  ;;  %v1488_v3 = vpop.f32.mrf.mxu1 }
  0xdf   :  { %v1490_v4 = vpop.f32.mrf.mxu0  ;;  %v1492_v5 = vpop.f32.mrf.mxu1 }
  0xe1   :  { %v1494_v6 = vpop.f32.mrf.mxu0  ;;  %v1496_v7 = vpop.f32.mrf.mxu1 }
  0xe3   :  { %v1498_v8 = vpop.f32.mrf.mxu0  ;;  %v1500_v9 = vpop.f32.mrf.mxu1 }
  0xe5   :  { %v1502_v10 = vpop.f32.mrf.mxu0  ;;  %v1504_v11 = vpop.f32.mrf.mxu1 }
  0xe7   :  { %v1176_v13 = vpop.f32.mrf.mxu0  ;;  %v1204_v14 = vpop.f32.mrf.mxu1 }
  0xe8   :  { %v652_v16 = vadd.f32 %v1176_v13, %v365_v12  ;;  %v400_v13 = vadd.f32 %v1480_v63, %v1478_v62 }
  0xe9   :  { %v572_v18 = vpop.f32.mrf.mxu0  ;;  %v800_v19 = vpop.f32.mrf.mxu1 }
  0xea   :  { %v880_v21 = vadd.f32 %v1204_v14, %v652_v16  ;;  %v651_v22 = vadd.f32 %v572_v18, %v360_v15  ;;  %v415_v18 = vadd.f32 %v1484_v1, %v1482_v0 }
  0xeb   :  { %v1179_v23 = vpop.f32.mrf.mxu0  ;;  %v1207_v24 = vpop.f32.mrf.mxu1 }
  0xec   :  { %v903_v26 = vadd.f32 %v1509_v17, %v880_v21  ;;  %v879_v27 = vadd.f32 %v800_v19, %v651_v22  ;;  %v654_v28 = vadd.f32 %v1179_v23, %v375_v20  ;;  %v410_v22 = vadd.f32 %v1488_v3, %v1486_v2 }
  0xed   :  { %v582_v29 = vpop.f32.mrf.mxu0  ;;  %v810_v30 = vpop.f32.mrf.mxu1 }
  0xee   :  { %920 = vst.msk [vmem:[%s1610_s3 + $0x8] sm:$0xff] %vm918_vm1, %v903_v26  ;;  %v902_v32 = vadd.f32 %v1509_v17, %v879_v27  ;;  %v882_v33 = vadd.f32 %v1207_v24, %v654_v28  ;;  %v653_v34 = vadd.f32 %v582_v29, %v370_v25  ;;  %v425_v26 = vadd.f32 %v1492_v5, %v1490_v4 }
  0xef   :  { %v1182_v35 = vpop.f32.mrf.mxu0  ;;  %v1210_v36 = vpop.f32.mrf.mxu1 }
  0xf0   :  { %919 = vst.msk [vmem:[%s1610_s3] sm:$0xff] %vm918_vm1, %v902_v32  ;;  %v905_v38 = vadd.f32 %v1509_v17, %v882_v33  ;;  %v881_v39 = vadd.f32 %v810_v30, %v653_v34  ;;  %v656_v40 = vadd.f32 %v1182_v35, %v385_v31  ;;  %v420_v30 = vadd.f32 %v1496_v7, %v1494_v6 }
  0xf1   :  { %v592_v41 = vpop.f32.mrf.mxu0  ;;  %v820_v42 = vpop.f32.mrf.mxu1  ;;  %v435_v34 = vadd.f32 %v1500_v9, %v1498_v8 }
  0xf2   :  { %922 = vst.msk [vmem:[%s1610_s3 + $0x18] sm:$0xff] %vm918_vm1, %v905_v38  ;;  %v904_v44 = vadd.f32 %v1509_v17, %v881_v39  ;;  %v884_v45 = vadd.f32 %v1210_v36, %v656_v40  ;;  %v655_v46 = vadd.f32 %v592_v41, %v380_v37  ;;  %v430_v38 = vadd.f32 %v1504_v11, %v1502_v10 }
  0xf3   :  { %v1185_v47 = vpop.f32.mrf.mxu0  ;;  %v1213_v48 = vpop.f32.mrf.mxu1 }
  0xf4   :  { %921 = vst.msk [vmem:[%s1610_s3 + $0x10] sm:$0xff] %vm918_vm1, %v904_v44  ;;  %v907_v50 = vadd.f32 %v1509_v17, %v884_v45  ;;  %v883_v51 = vadd.f32 %v820_v42, %v655_v46  ;;  %v658_v52 = vadd.f32 %v1185_v47, %v395_v43 }
  0xf5   :  { %v602_v53 = vpop.f32.mrf.mxu0  ;;  %v830_v54 = vpop.f32.mrf.mxu1 }
  0xf6   :  { %924 = vst.msk [vmem:[%s1610_s3 + $0x28] sm:$0xff] %vm918_vm1, %v907_v50  ;;  %v906_v56 = vadd.f32 %v1509_v17, %v883_v51  ;;  %v886_v57 = vadd.f32 %v1213_v48, %v658_v52  ;;  %v657_v58 = vadd.f32 %v602_v53, %v390_v49 }
  0xf7   :  { %v1188_v59 = vpop.f32.mrf.mxu0  ;;  %v1216_v12 = vpop.f32.mrf.mxu1 }
  0xf8   :  { %923 = vst.msk [vmem:[%s1610_s3 + $0x20] sm:$0xff] %vm918_vm1, %v906_v56  ;;  %v909_v60 = vadd.f32 %v1509_v17, %v886_v57  ;;  %v885_v61 = vadd.f32 %v830_v54, %v657_v58  ;;  %v660_v14 = vadd.f32 %v1188_v59, %v405_v55 }
  0xf9   :  { %v612_v15 = vpop.f32.mrf.mxu0  ;;  %v840_v16 = vpop.f32.mrf.mxu1 }
  0xfa   :  { %926 = vst.msk [vmem:[%s1610_s3 + $0x38] sm:$0xff] %vm918_vm1, %v909_v60  ;;  %v908_v62 = vadd.f32 %v1509_v17, %v885_v61  ;;  %v888_v63 = vadd.f32 %v1216_v12, %v660_v14  ;;  %v659_v19 = vadd.f32 %v612_v15, %v400_v13 }
  0xfb   :  { %v1191_v20 = vpop.f32.mrf.mxu0  ;;  %v1219_v21 = vpop.f32.mrf.mxu1 }
  0xfc   :  { %925 = vst.msk [vmem:[%s1610_s3 + $0x30] sm:$0xff] %vm918_vm1, %v908_v62  ;;  %v911_v0 = vadd.f32 %v1509_v17, %v888_v63  ;;  %v887_v1 = vadd.f32 %v840_v16, %v659_v19  ;;  %v662_v23 = vadd.f32 %v1191_v20, %v415_v18 }
  0xfd   :  { %v622_v24 = vpop.f32.mrf.mxu0  ;;  %v850_v25 = vpop.f32.mrf.mxu1 }
  0xfe   :  { %928 = vst.msk [vmem:[%s1610_s3 + $0x48] sm:$0xff] %vm918_vm1, %v911_v0  ;;  %v910_v2 = vadd.f32 %v1509_v17, %v887_v1  ;;  %v890_v3 = vadd.f32 %v1219_v21, %v662_v23  ;;  %v661_v27 = vadd.f32 %v622_v24, %v410_v22 }
  0xff   :  { %v1194_v28 = vpop.f32.mrf.mxu0  ;;  %v1222_v29 = vpop.f32.mrf.mxu1 }
 0x100   :  { %927 = vst.msk [vmem:[%s1610_s3 + $0x40] sm:$0xff] %vm918_vm1, %v910_v2  ;;  %v913_v4 = vadd.f32 %v1509_v17, %v890_v3  ;;  %v889_v5 = vadd.f32 %v850_v25, %v661_v27  ;;  %v664_v31 = vadd.f32 %v1194_v28, %v425_v26 }
 0x101   :  { %v632_v32 = vpop.f32.mrf.mxu0  ;;  %v860_v33 = vpop.f32.mrf.mxu1 }
 0x102   :  { %930 = vst.msk [vmem:[%s1610_s3 + $0x58] sm:$0xff] %vm918_vm1, %v913_v4  ;;  %v912_v6 = vadd.f32 %v1509_v17, %v889_v5  ;;  %v892_v7 = vadd.f32 %v1222_v29, %v664_v31  ;;  %v663_v35 = vadd.f32 %v632_v32, %v420_v30 }
 0x103   :  { %v1197_v36 = vpop.f32.mrf.mxu0  ;;  %v1225_v37 = vpop.f32.mrf.mxu1 }
 0x104   :  { %929 = vst.msk [vmem:[%s1610_s3 + $0x50] sm:$0xff] %vm918_vm1, %v912_v6  ;;  %v915_v8 = vadd.f32 %v1509_v17, %v892_v7  ;;  %v891_v9 = vadd.f32 %v860_v33, %v663_v35  ;;  %v666_v39 = vadd.f32 %v1197_v36, %v435_v34 }
 0x105   :  { %v642_v40 = vpop.f32.mrf.mxu0  ;;  %v870_v10 = vpop.f32.mrf.mxu1 }
 0x106   :  { %932 = vst.msk [vmem:[%s1610_s3 + $0x68] sm:$0xff] %vm918_vm1, %v915_v8  ;;  %v914_v41 = vadd.f32 %v1509_v17, %v891_v9  ;;  %v894_v42 = vadd.f32 %v1225_v37, %v666_v39  ;;  %v665_v43 = vadd.f32 %v642_v40, %v430_v38 }
 0x108   :  { %931 = vst.msk [vmem:[%s1610_s3 + $0x60] sm:$0xff] %vm918_vm1, %v914_v41  ;;  %v917_v11 = vadd.f32 %v1509_v17, %v894_v42  ;;  %v893_v44 = vadd.f32 %v870_v10, %v665_v43 }
 0x10a   :  { %934 = vst.msk [vmem:[%s1610_s3 + $0x78] sm:$0xff] %vm918_vm1, %v917_v11  ;;  %v916_v45 = vadd.f32 %v1509_v17, %v893_v44 }
 0x10c   :  { %933 = vst.msk [vmem:[%s1610_s3 + $0x70] sm:$0xff] %vm918_vm1, %v916_v45 }

</bundles_post_ra>
